<compile_context>
chip_gen: v7x
topology: tpu7x:2x2x1
jax: 0.10.0
libtpu: 0.0.40
codegen_flags: <defaults>
</compile_context>

<pallas_src>
import functools

import jax
import jax.numpy as jnp
from jax import lax
from jax.experimental import pallas as pl
from jax.experimental.pallas import tpu as pltpu

LANE = 128
NEG_BIG = -1e30     # pre-baked into padded b2 columns; exp() underflows to 0
TB_MAX = 128        # batch rows per grid step (amortizes per-step overhead)


def _model_kernel(txtocr_ref, img_ref, label_ref,
                  wt_ref, wi_ref, wf_ref, w1_ref, w2_ref, bias_ref,
                  logits_ref, nll_ref,
                  *, tb, to_dim, img_feat_dim, fusion_out, hidden_size,
                  nc_pad, b_off):
    f32 = jnp.float32

    # ---- packed biases: each section starts on a 128-lane boundary ----
    b_to = bias_ref[:, b_off[0]:b_off[0] + to_dim]        # (1, 2*Ft) = [bt | bt]
    b_i = bias_ref[:, b_off[1]:b_off[1] + img_feat_dim]   # (1, Fi)
    b_f = bias_ref[:, b_off[2]:b_off[2] + fusion_out]     # (1, Fo)
    b_1 = bias_ref[:, b_off[3]:b_off[3] + hidden_size]    # (1, H)
    b_2 = bias_ref[:, b_off[4]:b_off[4] + nc_pad]         # (1, nc_pad), NEG_BIG pad

    # ---- text + ocr branches share text_module weights ----
    # lane-concatenated [text | ocr] input x block-diagonal blkdiag(wt, wt):
    # both branch outputs land lane-contiguous -> no concat/split anywhere.
    to_feat = jnp.maximum(
        jnp.dot(txtocr_ref[...], wt_ref[...],
                preferred_element_type=f32) + b_to, 0.0)                 # (tb, 2*Ft)

    # ---- image branch: GAP folded into the matmul ----
    # wi_rep (built in the wrapper) is wi replicated over H*W and scaled by 1/(H*W),
    # so one bf16 x bf16 -> f32 MXU dot replaces the XLU mean + K=C matmul.
    img_feat = jnp.maximum(
        jnp.dot(img_ref[...], wi_ref[...],
                preferred_element_type=f32) + b_i, 0.0)                  # (tb, Fi)

    # ---- early fusion: two accumulating dots on static row-blocks of wf ----
    # wf rows were reordered in the wrapper to [text | ocr | image].
    fused = jnp.maximum(
        jnp.dot(to_feat, wf_ref[:to_dim, :], preferred_element_type=f32)
        + jnp.dot(img_feat, wf_ref[to_dim:, :], preferred_element_type=f32)
        + b_f, 0.0)                                                      # (tb, Fo)
    # TODO(synk): dropout is eval-mode identity (torch training-mode RNG not reproducible)

    # ---- classifier head (w2 lane-padded to nc_pad columns) ----
    hidden = jnp.maximum(
        jnp.dot(fused, w1_ref[...], preferred_element_type=f32) + b_1, 0.0)
    logits = jnp.dot(hidden, w2_ref[...], preferred_element_type=f32) + b_2
    logits_ref[...] = logits                                             # lane-dense store

    # ---- cross-entropy pieces ----
    # Padded class columns already carry ~NEG_BIG via the b2 padding, so no class mask:
    # their exp() underflows to 0 and they never win the max.
    m = jnp.max(logits, axis=-1, keepdims=True)
    z = logits - m
    lse = jnp.log(jnp.sum(jnp.exp(z), axis=-1, keepdims=True))
    class_iota = lax.broadcasted_iota(jnp.int32, (tb, nc_pad), 1)
    onehot = class_iota == label_ref[...]                                # (tb,nc_pad) vs (tb,1)
    # Per-row NLL on the label lane, zeros elsewhere (lane-dense unmasked store).
    # The wrapper sums rows [:batch] and divides by the true batch, so padded rows
    # need no in-kernel masking.
    nll_ref[...] = jnp.where(onehot, lse - z, 0.0)


def text_image_resnet_ocr_forward(encoded_text, image, encoded_ocr, label,
                                  params, num_classes):
    """Packs weights/biases, tiles the batch, issues one pallas_call."""
    B, C, H, W = image.shape
    Din = encoded_text.shape[1]
    Ft = params["wt"].shape[1]           # text_feature_dim (== ocr feature width)
    Fi = params["wi"].shape[1]           # image_feature_dim
    Fo = params["wf"].shape[1]           # fusion_output_size
    Hd = params["w1"].shape[1]           # hidden_size
    HW = H * W
    CHW = C * HW
    to_dim = 2 * Ft

    nc_pad = ((num_classes + LANE - 1) // LANE) * LANE   # lane-dense logits width

    # Batch tiling: sublane-align; tile at TB_MAX rows for large batches so the
    # "parallel" grid axis spreads tiles over both TensorCores on v7x.
    # (For real throughput, callers should batch >=128 rows per call.)
    b_pad = ((B + 7) // 8) * 8
    if b_pad > TB_MAX:
        tb = TB_MAX
        b_pad = ((b_pad + tb - 1) // tb) * tb
    else:
        tb = b_pad
    nb = b_pad // tb

    def pad_rows(x, rows):
        if x.shape[0] == rows:           # skip the copy when already aligned
            return x
        return jnp.pad(x, ((0, rows - x.shape[0]),) + ((0, 0),) * (x.ndim - 1))

    # Activations.
    txtocr = pad_rows(
        jnp.concatenate([encoded_text, encoded_ocr], axis=1).astype(jnp.float32),
        b_pad)                                                        # (Bp, 2*Din)
    img2 = pad_rows(image.reshape(B, CHW).astype(jnp.bfloat16), b_pad)  # (Bp, C*HW) bf16
    label_col = pad_rows(label.astype(jnp.int32).reshape(B, 1), b_pad)  # (Bp, 1)

    # Block-diagonal text/ocr weight: blkdiag(wt, wt).
    wt = params["wt"].astype(jnp.float32)
    wt_blk = jnp.zeros((2 * Din, to_dim), jnp.float32)
    wt_blk = wt_blk.at[:Din, :Ft].set(wt).at[Din:, Ft:].set(wt)

    # GAP folded into the image weight. NOTE: wi_rep is (C*H*W, Fi); at real image
    # sizes re-check this against VMEM (64 MiB on v7x / 16 MiB scoped on v5e) and set
    # pltpu.CompilerParams(vmem_limit_bytes=...) or fall back to an in-kernel pooled dot.
    wi_rep = (jnp.repeat(params["wi"], HW, axis=0) / HW).astype(jnp.bfloat16)  # (CHW, Fi)

    # Fusion weight reordered to rows [text | ocr | image] so the kernel's two
    # row-block dots match the lane layout of the branch features.
    wf = params["wf"]
    wf_pack = jnp.concatenate([wf[:Ft], wf[Ft + Fi:], wf[Ft:Ft + Fi]], axis=0)

    # Classifier weight lane-padded with zeros; bias padded with NEG_BIG so the
    # padded logits are ~-1e30 and need no in-kernel class mask.
    w2_p = jnp.pad(params["w2"], ((0, 0), (0, nc_pad - num_classes)))
    b2_p = jnp.pad(params["b2"], ((0, 0), (0, nc_pad - num_classes)),
                   constant_values=NEG_BIG)

    # Pack all biases into one buffer; each section starts on a 128-lane boundary.
    b_to = jnp.concatenate([params["bt"], params["bt"]], axis=1)       # (1, 2*Ft)
    sections = [b_to, params["bi"], params["bf"], params["b1"], b2_p]
    widths = [to_dim, Fi, Fo, Hd, nc_pad]
    sec_w = [((w + LANE - 1) // LANE) * LANE for w in widths]
    offs = [0]
    for w in sec_w[:-1]:
        offs.append(offs[-1] + w)
    bias_packed = jnp.concatenate(
        [jnp.pad(s, ((0, 0), (0, sw - s.shape[1]))) for s, sw in zip(sections, sec_w)],
        axis=1)

    kernel = functools.partial(
        _model_kernel, tb=tb, to_dim=to_dim, img_feat_dim=Fi, fusion_out=Fo,
        hidden_size=Hd, nc_pad=nc_pad, b_off=tuple(offs))

    row2 = lambda i: (i, 0)     # batch-tiled inputs/outputs
    cst2 = lambda i: (0, 0)     # weights: constant index_map -> VMEM-resident

    logits_pad, nll_pad = pl.pallas_call(
        kernel,
        grid=(nb,),
        out_shape=(jax.ShapeDtypeStruct((b_pad, nc_pad), jnp.float32),
                   jax.ShapeDtypeStruct((b_pad, nc_pad), jnp.float32)),
        in_specs=[
            pl.BlockSpec((tb, 2 * Din), row2),       # [text | ocr]
            pl.BlockSpec((tb, CHW), row2),           # image (bf16, lane-dense)
            pl.BlockSpec((tb, 1), row2),             # labels
            pl.BlockSpec(wt_blk.shape, cst2),
            pl.BlockSpec(wi_rep.shape, cst2),
            pl.BlockSpec(wf_pack.shape, cst2),
            pl.BlockSpec(params["w1"].shape, cst2),
            pl.BlockSpec(w2_p.shape, cst2),
            pl.BlockSpec(bias_packed.shape, cst2),
        ],
        out_specs=(pl.BlockSpec((tb, nc_pad), row2),
                   pl.BlockSpec((tb, nc_pad), row2)),
        compiler_params=pltpu.CompilerParams(
            dimension_semantics=("parallel",)),
    )(txtocr, img2, label_col, wt_blk, wi_rep, wf_pack,
      params["w1"], w2_p, bias_packed)

    logits = logits_pad[:B, :num_classes]
    loss = jnp.sum(nll_pad[:B]) / B          # only the label lane is nonzero per row
    return logits, loss


def _linear_params(key, fan_in, fan_out):
    """Deterministic torch.nn.Linear-style init: U(-1/sqrt(fan_in), 1/sqrt(fan_in))."""
    kw, kb = jax.random.split(key)
    bound = 1.0 / jnp.sqrt(jnp.float32(fan_in))
    w = jax.random.uniform(kw, (fan_in, fan_out), jnp.float32, -bound, bound)
    b = jax.random.uniform(kb, (1, fan_out), jnp.float32, -bound, bound)
    return w, b


def _reference(encoded_text, image, encoded_ocr, label, params, num_classes):
    """Pure-JAX forward matching the PyTorch module (for correctness check)."""
    hi = lax.Precision.HIGHEST
    relu = jax.nn.relu
    tf = relu(jnp.dot(encoded_text, params["wt"], precision=hi) + params["bt"])
    pooled = jnp.mean(image.reshape(image.shape[0], image.shape[1], -1), axis=-1)
    imf = relu(jnp.dot(pooled, params["wi"], precision=hi) + params["bi"])
    of = relu(jnp.dot(encoded_ocr, params["wt"], precision=hi) + params["bt"])
    comb = jnp.concatenate([tf, imf, of], axis=1)
    fused = relu(jnp.dot(comb, params["wf"], precision=hi) + params["bf"])
    hidden = relu(jnp.dot(fused, params["w1"], precision=hi) + params["b1"])
    logits = jnp.dot(hidden, params["w2"], precision=hi) + params["b2"]
    logp = jax.nn.log_softmax(logits, axis=-1)
    nll = -jnp.take_along_axis(logp, label[:, None], axis=1)[:, 0]
    return logits, jnp.mean(nll)


if __name__ == "__main__":
    # Small, forward-consistent shapes.
    B = 2
    TEXT_IN = 32              # sentence-transformer encoding dim (text and ocr)
    C, H, W = 4, 16, 16       # image NCHW
    TEXT_FEAT = 32            # text_feature_dim
    IMG_FEAT = 32             # image_feature_dim
    OCR_FEAT = 32             # ocr_feature_dim (== TEXT_FEAT: forward reuses text_module)
    FUSION_OUT = 64           # fusion_output_size
    HIDDEN = 32               # hidden_size (512 in the real module; small here)
    NUM_CLASSES = 8

    root = jax.random.PRNGKey(0)
    keys = jax.random.split(root, 10)

    wt, bt = _linear_params(keys[0], TEXT_IN, TEXT_FEAT)          # text_module
    wi, bi = _linear_params(keys[1], C, IMG_FEAT)                 # image_module head
    wf, bf = _linear_params(keys[2], TEXT_FEAT + IMG_FEAT + OCR_FEAT, FUSION_OUT)
    w1, b1 = _linear_params(keys[3], FUSION_OUT, HIDDEN)          # fc1
    w2, b2 = _linear_params(keys[4], HIDDEN, NUM_CLASSES)         # fc2
    params = dict(wt=wt, bt=bt, wi=wi, bi=bi, wf=wf, bf=bf,
                  w1=w1, b1=b1, w2=w2, b2=b2)

    encoded_text = jax.random.normal(keys[5], (B, TEXT_IN), jnp.float32)
    image = jax.random.normal(keys[6], (B, C, H, W), jnp.float32)
    encoded_ocr = jax.random.normal(keys[7], (B, TEXT_IN), jnp.float32)
    label = jax.random.randint(keys[8], (B,), 0, NUM_CLASSES)

    logits, loss = text_image_resnet_ocr_forward(
        encoded_text, image, encoded_ocr, label, params, NUM_CLASSES)
    jax.block_until_ready((logits, loss))

    assert logits.shape == (B, NUM_CLASSES)
    assert loss.shape == ()
    assert bool(jnp.isfinite(loss)) and bool(jnp.all(jnp.isfinite(logits)))

    ref_logits, ref_loss = _reference(encoded_text, image, encoded_ocr,
                                      label, params, NUM_CLASSES)
    assert bool(jnp.allclose(logits, ref_logits, rtol=1e-3, atol=1e-3))
    assert bool(jnp.allclose(loss, ref_loss, rtol=1e-3, atol=1e-3))
    print("KERNEL_OK")
</pallas_src>

<mosaic_0001>
module attributes {stable_mosaic.version = 11 : i64} {
  func.func @_model_kernel(%arg0: i32, %arg1: memref<8x64xf32, #tpu.memory_space<vmem>>, %arg2: memref<8x1024xbf16, #tpu.memory_space<vmem>>, %arg3: memref<8x1xi32, #tpu.memory_space<vmem>>, %arg4: memref<64x64xf32, #tpu.memory_space<vmem>>, %arg5: memref<1024x32xbf16, #tpu.memory_space<vmem>>, %arg6: memref<96x64xf32, #tpu.memory_space<vmem>>, %arg7: memref<64x32xf32, #tpu.memory_space<vmem>>, %arg8: memref<32x128xf32, #tpu.memory_space<vmem>>, %arg9: memref<1x640xf32, #tpu.memory_space<vmem>>, %arg10: memref<8x128xf32, #tpu.memory_space<vmem>>, %arg11: memref<8x128xf32, #tpu.memory_space<vmem>>) attributes {dimension_semantics = [#tpu.dimension_semantics<parallel>], iteration_bounds = array<i64: 1>, scalar_prefetch = 0 : i64, scratch_operands = 0 : i64, tpu.core_type = #tpu.core_type<tc>, window_params = [{transform_indices = @transform_0, window_bounds = array<i64: 8, 64>}, {transform_indices = @transform_1, window_bounds = array<i64: 8, 1024>}, {transform_indices = @transform_2, window_bounds = array<i64: 8, 1>}, {pipeline_mode = #tpu.pipeline_mode<synchronous>, transform_indices = @transform_3, window_bounds = array<i64: 64, 64>}, {pipeline_mode = #tpu.pipeline_mode<synchronous>, transform_indices = @transform_4, window_bounds = array<i64: 1024, 32>}, {pipeline_mode = #tpu.pipeline_mode<synchronous>, transform_indices = @transform_5, window_bounds = array<i64: 96, 64>}, {pipeline_mode = #tpu.pipeline_mode<synchronous>, transform_indices = @transform_6, window_bounds = array<i64: 64, 32>}, {pipeline_mode = #tpu.pipeline_mode<synchronous>, transform_indices = @transform_7, window_bounds = array<i64: 32, 128>}, {pipeline_mode = #tpu.pipeline_mode<synchronous>, transform_indices = @transform_8, window_bounds = array<i64: 1, 640>}, {transform_indices = @transform_9, window_bounds = array<i64: 8, 128>}, {transform_indices = @transform_10, window_bounds = array<i64: 8, 128>}]} {
    %c0 = arith.constant 0 : index
    %c0_0 = arith.constant 0 : index
    %0 = vector.load %arg9[%c0, %c0_0] : memref<1x640xf32, #tpu.memory_space<vmem>>, vector<1x64xf32>
    %c0_1 = arith.constant 0 : index
    %c128 = arith.constant 128 : index
    %1 = vector.load %arg9[%c0_1, %c128] : memref<1x640xf32, #tpu.memory_space<vmem>>, vector<1x32xf32>
    %c0_2 = arith.constant 0 : index
    %c256 = arith.constant 256 : index
    %2 = vector.load %arg9[%c0_2, %c256] : memref<1x640xf32, #tpu.memory_space<vmem>>, vector<1x64xf32>
    %c0_3 = arith.constant 0 : index
    %c384 = arith.constant 384 : index
    %3 = vector.load %arg9[%c0_3, %c384] : memref<1x640xf32, #tpu.memory_space<vmem>>, vector<1x32xf32>
    %c0_4 = arith.constant 0 : index
    %c512 = arith.constant 512 : index
    %4 = vector.load %arg9[%c0_4, %c512] : memref<1x640xf32, #tpu.memory_space<vmem>>, vector<1x128xf32>
    %c0_5 = arith.constant 0 : index
    %c0_6 = arith.constant 0 : index
    %5 = vector.load %arg1[%c0_5, %c0_6] : memref<8x64xf32, #tpu.memory_space<vmem>>, vector<8x64xf32>
    %c0_7 = arith.constant 0 : index
    %c0_8 = arith.constant 0 : index
    %6 = vector.load %arg4[%c0_7, %c0_8] : memref<64x64xf32, #tpu.memory_space<vmem>>, vector<64x64xf32>
    %cst = arith.constant dense<0.000000e+00> : vector<8x64xf32>
    %7 = tpu.matmul %5, %6, %cst {dimension_numbers = #tpu.dot_dimension_numbers<[1], [0], [0], [1], [0, 0, 1, 1], [], []>} : vector<8x64xf32>, vector<64x64xf32>, vector<8x64xf32> -> vector<8x64xf32>
    %8 = vector.broadcast %0 : vector<1x64xf32> to vector<8x64xf32>
    %9 = arith.addf %7, %8 : vector<8x64xf32>
    %cst_9 = arith.constant 0.000000e+00 : f32
    %10 = vector.broadcast %cst_9 : f32 to vector<8x64xf32>
    %11 = arith.maximumf %9, %10 : vector<8x64xf32>
    %c0_10 = arith.constant 0 : index
    %c0_11 = arith.constant 0 : index
    %12 = vector.load %arg2[%c0_10, %c0_11] : memref<8x1024xbf16, #tpu.memory_space<vmem>>, vector<8x1024xbf16>
    %c0_12 = arith.constant 0 : index
    %c0_13 = arith.constant 0 : index
    %13 = vector.load %arg5[%c0_12, %c0_13] : memref<1024x32xbf16, #tpu.memory_space<vmem>>, vector<1024x32xbf16>
    %cst_14 = arith.constant dense<0.000000e+00> : vector<8x32xf32>
    %14 = tpu.matmul %12, %13, %cst_14 {dimension_numbers = #tpu.dot_dimension_numbers<[1], [0], [0], [1], [0, 0, 1, 1], [], []>} : vector<8x1024xbf16>, vector<1024x32xbf16>, vector<8x32xf32> -> vector<8x32xf32>
    %15 = vector.broadcast %1 : vector<1x32xf32> to vector<8x32xf32>
    %16 = arith.addf %14, %15 : vector<8x32xf32>
    %cst_15 = arith.constant 0.000000e+00 : f32
    %17 = vector.broadcast %cst_15 : f32 to vector<8x32xf32>
    %18 = arith.maximumf %16, %17 : vector<8x32xf32>
    %c0_16 = arith.constant 0 : index
    %c0_17 = arith.constant 0 : index
    %19 = vector.load %arg6[%c0_16, %c0_17] : memref<96x64xf32, #tpu.memory_space<vmem>>, vector<64x64xf32>
    %cst_18 = arith.constant dense<0.000000e+00> : vector<8x64xf32>
    %20 = tpu.matmul %11, %19, %cst_18 {dimension_numbers = #tpu.dot_dimension_numbers<[1], [0], [0], [1], [0, 0, 1, 1], [], []>} : vector<8x64xf32>, vector<64x64xf32>, vector<8x64xf32> -> vector<8x64xf32>
    %c64 = arith.constant 64 : index
    %c0_19 = arith.constant 0 : index
    %21 = vector.load %arg6[%c64, %c0_19] : memref<96x64xf32, #tpu.memory_space<vmem>>, vector<32x64xf32>
    %cst_20 = arith.constant dense<0.000000e+00> : vector<8x64xf32>
    %22 = tpu.matmul %18, %21, %cst_20 {dimension_numbers = #tpu.dot_dimension_numbers<[1], [0], [0], [1], [0, 0, 1, 1], [], []>} : vector<8x32xf32>, vector<32x64xf32>, vector<8x64xf32> -> vector<8x64xf32>
    %23 = arith.addf %20, %22 : vector<8x64xf32>
    %24 = vector.broadcast %2 : vector<1x64xf32> to vector<8x64xf32>
    %25 = arith.addf %23, %24 : vector<8x64xf32>
    %cst_21 = arith.constant 0.000000e+00 : f32
    %26 = vector.broadcast %cst_21 : f32 to vector<8x64xf32>
    %27 = arith.maximumf %25, %26 : vector<8x64xf32>
    %c0_22 = arith.constant 0 : index
    %c0_23 = arith.constant 0 : index
    %28 = vector.load %arg7[%c0_22, %c0_23] : memref<64x32xf32, #tpu.memory_space<vmem>>, vector<64x32xf32>
    %cst_24 = arith.constant dense<0.000000e+00> : vector<8x32xf32>
    %29 = tpu.matmul %27, %28, %cst_24 {dimension_numbers = #tpu.dot_dimension_numbers<[1], [0], [0], [1], [0, 0, 1, 1], [], []>} : vector<8x64xf32>, vector<64x32xf32>, vector<8x32xf32> -> vector<8x32xf32>
    %30 = vector.broadcast %3 : vector<1x32xf32> to vector<8x32xf32>
    %31 = arith.addf %29, %30 : vector<8x32xf32>
    %cst_25 = arith.constant 0.000000e+00 : f32
    %32 = vector.broadcast %cst_25 : f32 to vector<8x32xf32>
    %33 = arith.maximumf %31, %32 : vector<8x32xf32>
    %c0_26 = arith.constant 0 : index
    %c0_27 = arith.constant 0 : index
    %34 = vector.load %arg8[%c0_26, %c0_27] : memref<32x128xf32, #tpu.memory_space<vmem>>, vector<32x128xf32>
    %cst_28 = arith.constant dense<0.000000e+00> : vector<8x128xf32>
    %35 = tpu.matmul %33, %34, %cst_28 {dimension_numbers = #tpu.dot_dimension_numbers<[1], [0], [0], [1], [0, 0, 1, 1], [], []>} : vector<8x32xf32>, vector<32x128xf32>, vector<8x128xf32> -> vector<8x128xf32>
    %36 = vector.broadcast %4 : vector<1x128xf32> to vector<8x128xf32>
    %37 = arith.addf %35, %36 : vector<8x128xf32>
    %c0_29 = arith.constant 0 : index
    %c0_30 = arith.constant 0 : index
    %38 = vector.load %arg10[%c0_29, %c0_30] : memref<8x128xf32, #tpu.memory_space<vmem>>, vector<8x128xf32>
    tpu.vector_store %arg10[%c0_29, %c0_30], %37 {strides = array<i32>} : memref<8x128xf32, #tpu.memory_space<vmem>>, vector<8x128xf32>,
    %cst_31 = arith.constant dense<0xFF800000> : vector<8xf32>
    %39 = vector.multi_reduction <maximumf>, %37, %cst_31 [1] : vector<8x128xf32> to vector<8xf32>
    %40 = vector.shape_cast %39 : vector<8xf32> to vector<8x1xf32>
    %41 = vector.broadcast %40 : vector<8x1xf32> to vector<8x128xf32>
    %42 = arith.subf %37, %41 : vector<8x128xf32>
    %43 = math.exp %42 : vector<8x128xf32>
    %cst_32 = arith.constant dense<0.000000e+00> : vector<8xf32>
    %44 = vector.multi_reduction <add>, %43, %cst_32 [1] : vector<8x128xf32> to vector<8xf32>
    %45 = vector.shape_cast %44 : vector<8xf32> to vector<8x1xf32>
    %46 = math.log %45 : vector<8x1xf32>
    %47 = tpu.iota {dimensions = array<i32: 1>} : vector<8x128xi32>
    %c0_33 = arith.constant 0 : index
    %c0_34 = arith.constant 0 : index
    %48 = vector.load %arg3[%c0_33, %c0_34] : memref<8x1xi32, #tpu.memory_space<vmem>>, vector<8x1xi32>
    %49 = vector.broadcast %48 : vector<8x1xi32> to vector<8x128xi32>
    %50 = arith.cmpi eq, %47, %49 : vector<8x128xi32>
    %51 = vector.broadcast %46 : vector<8x1xf32> to vector<8x128xf32>
    %52 = arith.subf %51, %42 : vector<8x128xf32>
    %cst_35 = arith.constant 0.000000e+00 : f32
    %53 = vector.broadcast %cst_35 : f32 to vector<8x128xf32>
    %54 = arith.select %50, %52, %53 : vector<8x128xi1>, vector<8x128xf32>
    %c0_36 = arith.constant 0 : index
    %c0_37 = arith.constant 0 : index
    %55 = vector.load %arg11[%c0_36, %c0_37] : memref<8x128xf32, #tpu.memory_space<vmem>>, vector<8x128xf32>
    tpu.vector_store %arg11[%c0_36, %c0_37], %54 {strides = array<i32>} : memref<8x128xf32, #tpu.memory_space<vmem>>, vector<8x128xf32>,
    return
  }
  func.func @transform_0(%arg0: i32) -> (i32, i32) {
    %c0_i32 = arith.constant 0 : i32
    %c0_i32_0 = arith.constant 0 : i32
    return %arg0, %c0_i32 : i32, i32
  }
  func.func @transform_1(%arg0: i32) -> (i32, i32) {
    %c0_i32 = arith.constant 0 : i32
    %c0_i32_0 = arith.constant 0 : i32
    return %arg0, %c0_i32 : i32, i32
  }
  func.func @transform_2(%arg0: i32) -> (i32, i32) {
    %c0_i32 = arith.constant 0 : i32
    %c0_i32_0 = arith.constant 0 : i32
    return %arg0, %c0_i32 : i32, i32
  }
  func.func @transform_3(%arg0: i32) -> (i32, i32) {
    %c0_i32 = arith.constant 0 : i32
    %c0_i32_0 = arith.constant 0 : i32
    %c0_i32_1 = arith.constant 0 : i32
    return %c0_i32, %c0_i32_0 : i32, i32
  }
  func.func @transform_4(%arg0: i32) -> (i32, i32) {
    %c0_i32 = arith.constant 0 : i32
    %c0_i32_0 = arith.constant 0 : i32
    %c0_i32_1 = arith.constant 0 : i32
    return %c0_i32, %c0_i32_0 : i32, i32
  }
  func.func @transform_5(%arg0: i32) -> (i32, i32) {
    %c0_i32 = arith.constant 0 : i32
    %c0_i32_0 = arith.constant 0 : i32
    %c0_i32_1 = arith.constant 0 : i32
    return %c0_i32, %c0_i32_0 : i32, i32
  }
  func.func @transform_6(%arg0: i32) -> (i32, i32) {
    %c0_i32 = arith.constant 0 : i32
    %c0_i32_0 = arith.constant 0 : i32
    %c0_i32_1 = arith.constant 0 : i32
    return %c0_i32, %c0_i32_0 : i32, i32
  }
  func.func @transform_7(%arg0: i32) -> (i32, i32) {
    %c0_i32 = arith.constant 0 : i32
    %c0_i32_0 = arith.constant 0 : i32
    %c0_i32_1 = arith.constant 0 : i32
    return %c0_i32, %c0_i32_0 : i32, i32
  }
  func.func @transform_8(%arg0: i32) -> (i32, i32) {
    %c0_i32 = arith.constant 0 : i32
    %c0_i32_0 = arith.constant 0 : i32
    %c0_i32_1 = arith.constant 0 : i32
    return %c0_i32, %c0_i32_0 : i32, i32
  }
  func.func @transform_9(%arg0: i32) -> (i32, i32) {
    %c0_i32 = arith.constant 0 : i32
    %c0_i32_0 = arith.constant 0 : i32
    return %arg0, %c0_i32 : i32, i32
  }
  func.func @transform_10(%arg0: i32) -> (i32, i32) {
    %c0_i32 = arith.constant 0 : i32
    %c0_i32_0 = arith.constant 0 : i32
    return %arg0, %c0_i32 : i32, i32
  }
}

</mosaic_0001>

<bundles_post_ra>
// kernel: tpu_custom_call.1
= control target key start
LH: loop header
LB: loop body
LE: loop exit
PB: predicated region body
PF: predicated region fallthrough
CT: control target
= control target key end

     0   :  { %16 = vsyncpa [#allocation3], 0  ;;  %v1695_v2 = vmov 0.0|0.0   ;;  %vm1696_vm0 = vmmov 0   ;;  %v1697_v7 = vmov 0.0   ;;  %vm57_vm1 = vcmask 523264   ;;  %s2132_s0 = inlined_call_operand.vmem [shape: f32[8,64], index: 0, kind: input, shape index: {}]   ;;  %s2133_s1 = inlined_call_operand.vmem [shape: bf16[8,1024], index: 1, kind: input, shape index: {}]   ;;  %s2134_s2 = inlined_call_operand.vmem [shape: s32[8,1], index: 2, kind: input, shape index: {}]   ;;  %s2135_s3 = inlined_call_operand.vmem [shape: f32[64,64], index: 3, kind: input, shape index: {}]   ;;  %s2136_s4 = inlined_call_operand.vmem [shape: bf16[1024,32], index: 4, kind: input, shape index: {}]   ;;  %s2137_s5 = inlined_call_operand.vmem [shape: f32[96,64], index: 5, kind: input, shape index: {}]   ;;  %s2138_s6 = inlined_call_operand.vmem [shape: f32[64,32], index: 6, kind: input, shape index: {}]   ;;  %s2139_s7 = inlined_call_operand.vmem [shape: f32[32,128], index: 7, kind: input, shape index: {}]   ;;  %s2140_s8 = inlined_call_operand.vmem [shape: f32[1,640], index: 8, kind: input, shape index: {}]   ;;  %s2141_s9 = inlined_call_operand.hbm [shape: f32[8,128], index: 9, kind: output, shape index: {0}]   ;;  %s2142_s10 = inlined_call_operand.hbm [shape: f32[8,128], index: 10, kind: output, shape index: {1}]  }
   0x1   :  { %v43_v0 = vld [vmem:[%s2135_s3] sm:$0xff]  ;;  %v44_v1 = vld [vmem:[%s2135_s3 + $0x8] sm:$0xff]  ;;  %1515 = vmatprep.subr.bf16.mxu0 %v1695_v2  ;;  %v45_v6 = vld [vmem:[%s2135_s3 + $0x10] sm:$0xff]  ;;  %1452 = vmatprep.mubr.msk.f32.mxu0 %vm1696_vm0, %v1697_v7 }
   0x2   :  { %v1516_v3 = vpack.c.bf16 %v44_v1, %v43_v0  ;;  %v1571_v4 = vld [vmem:[%s2136_s4 + $0x40] sm:$0xff]   ;;  %v46_v8 = vld [vmem:[%s2135_s3 + $0x18] sm:$0xff]  ;;  %v1573_v10 = vld [vmem:[%s2136_s4 + $0x48] sm:$0xff]  }
   0x3   :  { %v1572_v5 = vld [vmem:[%s2136_s4] sm:$0xff]   ;;  %1320 = vmatprep.subr.bf16.mxu1 %v1571_v4  ;;  %v1519_v9 = vpack.c.bf16 %v46_v8, %v45_v6  ;;  %v1574_v11 = vld [vmem:[%s2136_s4 + $0x8] sm:$0xff]   ;;  %v1575_v14 = vld [vmem:[%s2136_s4 + $0x50] sm:$0xff]  }
   0x4   :  { %1517 = vmatpush3.bf16.msra.mxu0 %v1516_v3  ;;  %1321 = vmatpush3.bf16.msra.mxu1 %v1572_v5  ;;  %v47_v12 = vld [vmem:[%s2135_s3 + $0x20] sm:$0xff]  ;;  %v48_v13 = vld [vmem:[%s2135_s3 + $0x28] sm:$0xff]  ;;  %v1576_v16 = vld [vmem:[%s2136_s4 + $0x10] sm:$0xff]  }
   0x5   :  { %1518 = vmatprep.subr.bf16.mxu0 %v1695_v2  ;;  %1322 = vmatprep.subr.bf16.mxu1 %v1573_v10  ;;  %v1522_v15 = vpack.c.bf16 %v48_v13, %v47_v12  ;;  %v49_v17 = vld [vmem:[%s2135_s3 + $0x30] sm:$0xff]  ;;  %v50_v18 = vld [vmem:[%s2135_s3 + $0x38] sm:$0xff]  ;;  %v1579_v22 = vld [vmem:[%s2136_s4 + $0xc0] sm:$0xff]  }
   0x6   :  { %v1577_v19 = vld [vmem:[%s2136_s4 + $0x58] sm:$0xff]   ;;  %v1525_v21 = vpack.c.bf16 %v50_v18, %v49_v17  ;;  %v1580_v23 = vld [vmem:[%s2136_s4 + $0x60] sm:$0xff]   ;;  %v1583_v27 = vld [vmem:[%s2136_s4 + $0xc8] sm:$0xff]  }
   0x7   :  { %v1578_v20 = vld [vmem:[%s2136_s4 + $0x18] sm:$0xff]   ;;  %v42_v24 = vld [vmem:[%s2132_s0] sm:$0xff]  ;;  %v1584_v28 = vld [vmem:[%s2136_s4 + $0x68] sm:$0xff]  }
   0x8   :  { %1520 = vmatpush3.bf16.msra.mxu0 %v1519_v9  ;;  %1323 = vmatpush3.bf16.msra.mxu1 %v1574_v11  ;;  %v1581_v25 = vld [vmem:[%s2136_s4 + $0x80] sm:$0xff]   ;;  %v1585_v29 = vld [vmem:[%s2136_s4 + $0x88] sm:$0xff]   ;;  %v1587_v31 = vld [vmem:[%s2136_s4 + $0xd0] sm:$0xff]  }
   0x9   :  { %1521 = vmatprep.subr.bf16.mxu0 %v1695_v2  ;;  %1324 = vmatprep.subr.bf16.mxu1 %v1575_v14  ;;  %v1582_v26 = vld [vmem:[%s2136_s4 + $0x20] sm:$0xff]   ;;  %v1586_v30 = vld [vmem:[%s2136_s4 + $0x28] sm:$0xff]   ;;  %v1588_v32 = vld [vmem:[%s2136_s4 + $0x70] sm:$0xff]  }
   0xa   :  { %v1589_v33 = vld [vmem:[%s2136_s4 + $0x90] sm:$0xff]   ;;  %v1591_v35 = vld [vmem:[%s2136_s4 + $0xd8] sm:$0xff]   ;;  %v1595_v39 = vld [vmem:[%s2136_s4 + $0xe0] sm:$0xff]  }
   0xb   :  { %v1590_v34 = vld [vmem:[%s2136_s4 + $0x30] sm:$0xff]   ;;  %v1592_v36 = vld [vmem:[%s2136_s4 + $0x78] sm:$0xff]   ;;  %v132_v40 = vld [vmem:[%s2133_s1] sm:$0xff] }
   0xc   :  { %1523 = vmatpush3.bf16.msra.mxu0 %v1522_v15  ;;  %1325 = vmatpush3.bf16.msra.mxu1 %v1576_v16  ;;  %v1593_v37 = vld [vmem:[%s2136_s4 + $0x98] sm:$0xff]   ;;  %v1233_v41 = vcombine.high %v132_v40, %v132_v40  ;;  %v1598_v42 = vld [vmem:[%s2136_s4 + $0xa0] sm:$0xff]   ;;  %v1232_v44 = vcombine.low %v132_v40, %v132_v40  ;;  %v1601_v46 = vld [vmem:[%s2136_s4 + $0xe8] sm:$0xff]  }
   0xd   :  { %1524 = vmatprep.subr.bf16.mxu0 %v1695_v2  ;;  %1326 = vmatprep.subr.bf16.mxu1 %v1577_v19  ;;  %v1594_v38 = vld [vmem:[%s2136_s4 + $0x38] sm:$0xff]   ;;  %v1599_v43 = vld [vmem:[%s2136_s4 + $0x140] sm:$0xff]   ;;  %v1602_v47 = vld [vmem:[%s2136_s4 + $0xa8] sm:$0xff]  }
   0xe   :  { %714 = vmatprep.mubr.bf16.mxu1 %v1233_v41  ;;  %v1600_v45 = vld [vmem:[%s2136_s4 + $0x100] sm:$0xff]   ;;  %v1603_v48 = vld [vmem:[%s2136_s4 + $0x148] sm:$0xff]   ;;  %v1605_v50 = vld [vmem:[%s2136_s4 + $0xf0] sm:$0xff]  }
   0xf   :  { %v1604_v49 = vld [vmem:[%s2136_s4 + $0x108] sm:$0xff]   ;;  %v1606_v51 = vld [vmem:[%s2136_s4 + $0xb0] sm:$0xff]   ;;  %v1609_v54 = vld [vmem:[%s2136_s4 + $0xf8] sm:$0xff]  }
  0x10   :  { %1526 = vmatpush3.bf16.msra.mxu0 %v1525_v21  ;;  %1327 = vmatpush3.bf16.msra.mxu1 %v1578_v20  ;;  %v1607_v52 = vld [vmem:[%s2136_s4 + $0x150] sm:$0xff]   ;;  %v1610_v55 = vld [vmem:[%s2136_s4 + $0xb8] sm:$0xff]   ;;  %v133_v58 = vld [vmem:[%s2133_s1 + $0x8] sm:$0xff] }
  0x11   :  { %1342 = vmatprep.subr.bf16.mxu0 %v1579_v22  ;;  %1328 = vmatprep.subr.bf16.mxu1 %v1580_v23  ;;  %v1608_v53 = vld [vmem:[%s2136_s4 + $0x110] sm:$0xff]   ;;  %v1611_v56 = vld [vmem:[%s2136_s4 + $0x158] sm:$0xff]   ;;  %v1235_v59 = vcombine.high %v133_v58, %v133_v58  ;;  %v1615_v60 = vld [vmem:[%s2136_s4 + $0x1c0] sm:$0xff]   ;;  %v1234_v62 = vcombine.low %v133_v58, %v133_v58 }
  0x12   :  { %v1612_v57 = vld [vmem:[%s2136_s4 + $0x118] sm:$0xff]   ;;  %v1616_v61 = vld [vmem:[%s2136_s4 + $0x160] sm:$0xff]   ;;  %v1619_v1 = vld [vmem:[%s2136_s4 + $0x1c8] sm:$0xff]  }
  0x13   :  { %1453 = vmatmul.mubr.msk.f32.vlgmr.msra.gmra.mrb[0].mxu0 %vm57_vm1, %v42_v24  ;;  %v1617_v63 = vld [vmem:[%s2136_s4 + $0x180] sm:$0xff]   ;;  %v1620_v3 = vld [vmem:[%s2136_s4 + $0x168] sm:$0xff]   ;;  %v1623_v6 = vld [vmem:[%s2136_s4 + $0x1d0] sm:$0xff]  }
  0x14   :  { %1343 = vmatpush3.bf16.msra.mxu0 %v1581_v25  ;;  %1329 = vmatpush3.bf16.msra.mxu1 %v1582_v26  ;;  %v1618_v0 = vld [vmem:[%s2136_s4 + $0x120] sm:$0xff]   ;;  %v1621_v4 = vld [vmem:[%s2136_s4 + $0x188] sm:$0xff]   ;;  %v1624_v8 = vld [vmem:[%s2136_s4 + $0x170] sm:$0xff]  }
  0x15   :  { %1344 = vmatprep.subr.bf16.mxu0 %v1583_v27  ;;  %1330 = vmatprep.subr.bf16.mxu1 %v1584_v28  ;;  %v1622_v5 = vld [vmem:[%s2136_s4 + $0x128] sm:$0xff]   ;;  %v1625_v9 = vld [vmem:[%s2136_s4 + $0x190] sm:$0xff]   ;;  %v1627_v11 = vld [vmem:[%s2136_s4 + $0x1d8] sm:$0xff]  }
  0x16   :  { %754 = vmatprep.mubr.bf16.mxu0 %v1235_v59  ;;  %v1626_v10 = vld [vmem:[%s2136_s4 + $0x130] sm:$0xff]   ;;  %v1628_v12 = vld [vmem:[%s2136_s4 + $0x178] sm:$0xff]   ;;  %v1633_v17 = vld [vmem:[%s2136_s4 + $0x1e0] sm:$0xff]  }
  0x17   :  { %v1629_v13 = vld [vmem:[%s2136_s4 + $0x198] sm:$0xff]   ;;  %v134_v15 = vld [vmem:[%s2133_s1 + $0x10] sm:$0xff]  ;;  %v1634_v19 = vld [vmem:[%s2136_s4 + $0x1a0] sm:$0xff]  }
  0x18   :  { %1345 = vmatpush3.bf16.msra.mxu0 %v1585_v29  ;;  %1331 = vmatpush3.bf16.msra.mxu1 %v1586_v30  ;;  %v1630_v14 = vld [vmem:[%s2136_s4 + $0x138] sm:$0xff]   ;;  %v1237_v16 = vcombine.high %v134_v15, %v134_v15  ;;  %v1236_v18 = vcombine.low %v134_v15, %v134_v15  ;;  %v1635_v20 = vld [vmem:[%s2136_s4 + $0x1e8] sm:$0xff]   ;;  %v1637_v22 = vld [vmem:[%s2136_s4 + $0x1f0] sm:$0xff]  }
  0x19   :  { %1346 = vmatprep.subr.bf16.mxu0 %v1587_v31  ;;  %1332 = vmatprep.subr.bf16.mxu1 %v1588_v32  ;;  %v1636_v21 = vld [vmem:[%s2136_s4 + $0x1a8] sm:$0xff]   ;;  %v135_v23 = vld [vmem:[%s2133_s1 + $0x18] sm:$0xff] }
  0x1c   :  { %1347 = vmatpush3.bf16.msra.mxu0 %v1589_v33  ;;  %1333 = vmatpush3.bf16.msra.mxu1 %v1590_v34 }
  0x1d   :  { %1348 = vmatprep.subr.bf16.mxu0 %v1591_v35  ;;  %1334 = vmatprep.subr.bf16.mxu1 %v1592_v36 }
  0x20   :  { %1349 = vmatpush3.bf16.msra.mxu0 %v1593_v37  ;;  %1335 = vmatpush3.bf16.msra.mxu1 %v1594_v38 }
  0x21   :  { %1350 = vmatprep.subr.bf16.mxu0 %v1595_v39  ;;  %1364 = vmatprep.subr.bf16.mxu1 %v1599_v43 }
  0x23   :  { %715 = vmatmul.mubr.bf16.vlgmr.msra.gmra.mrb[0].mxu1 %v1232_v44 }
  0x24   :  { %1351 = vmatpush3.bf16.msra.mxu0 %v1598_v42  ;;  %1365 = vmatpush3.bf16.msra.mxu1 %v1600_v45 }
  0x25   :  { %1352 = vmatprep.subr.bf16.mxu0 %v1601_v46  ;;  %1366 = vmatprep.subr.bf16.mxu1 %v1603_v48 }
  0x26   :  { %794 = vmatprep.mubr.bf16.mxu1 %v1237_v16 }
  0x28   :  { %1353 = vmatpush3.bf16.msra.mxu0 %v1602_v47  ;;  %1367 = vmatpush3.bf16.msra.mxu1 %v1604_v49 }
  0x29   :  { %1354 = vmatprep.subr.bf16.mxu0 %v1605_v50  ;;  %1368 = vmatprep.subr.bf16.mxu1 %v1607_v52 }
  0x2c   :  { %1355 = vmatpush3.bf16.msra.mxu0 %v1606_v51  ;;  %1369 = vmatpush3.bf16.msra.mxu1 %v1608_v53 }
  0x2d   :  { %1356 = vmatprep.subr.bf16.mxu0 %v1609_v54  ;;  %1370 = vmatprep.subr.bf16.mxu1 %v1611_v56 }
  0x30   :  { %1357 = vmatpush3.bf16.msra.mxu0 %v1610_v55  ;;  %1371 = vmatpush3.bf16.msra.mxu1 %v1612_v57 }
  0x31   :  { %1386 = vmatprep.subr.bf16.mxu0 %v1615_v60  ;;  %1372 = vmatprep.subr.bf16.mxu1 %v1616_v61 }
  0x33   :  { %755 = vmatmul.mubr.bf16.vlgmr.msra.gmra.mrb[4].mxu0 %v1234_v62 }
  0x34   :  { %1387 = vmatpush3.bf16.msra.mxu0 %v1617_v63  ;;  %1373 = vmatpush3.bf16.msra.mxu1 %v1618_v0 }
  0x35   :  { %1388 = vmatprep.subr.bf16.mxu0 %v1619_v1  ;;  %1374 = vmatprep.subr.bf16.mxu1 %v1620_v3 }
  0x38   :  { %1389 = vmatpush3.bf16.msra.mxu0 %v1621_v4  ;;  %1375 = vmatpush3.bf16.msra.mxu1 %v1622_v5 }
  0x39   :  { %1390 = vmatprep.subr.bf16.mxu0 %v1623_v6  ;;  %1376 = vmatprep.subr.bf16.mxu1 %v1624_v8 }
  0x3c   :  { %1391 = vmatpush3.bf16.msra.mxu0 %v1625_v9  ;;  %1377 = vmatpush3.bf16.msra.mxu1 %v1626_v10 }
  0x3d   :  { %1392 = vmatprep.subr.bf16.mxu0 %v1627_v11  ;;  %1378 = vmatprep.subr.bf16.mxu1 %v1628_v12 }
  0x40   :  { %1393 = vmatpush3.bf16.msra.mxu0 %v1629_v13  ;;  %1379 = vmatpush3.bf16.msra.mxu1 %v1630_v14 }
  0x41   :  { %1394 = vmatprep.subr.bf16.mxu0 %v1633_v17  ;;  %1527 = vmatprep.subr.bf16.mxu1 %v1695_v2 }
  0x43   :  { %795 = vmatmul.mubr.bf16.vlgmr.msra.gmra.mrb[4].mxu1 %v1236_v18 }
  0x44   :  { %1395 = vmatpush3.bf16.msra.mxu0 %v1634_v19  ;;  %1463 = vmatprep.mubr.msk.f32.mxu1 %vm1696_vm0, %v1697_v7 }
  0x45   :  { %1396 = vmatprep.subr.bf16.mxu0 %v1635_v20 }
  0x46   :  { %17 = vsyncpa [#allocation5], 0  ;;  %v1239_v24 = vcombine.high %v135_v23, %v135_v23  ;;  %v1638_v25 = vld [vmem:[%s2136_s4 + $0x1b0] sm:$0xff]   ;;  %v1639_v26 = vld [vmem:[%s2136_s4 + $0x1f8] sm:$0xff]   ;;  %v1238_v28 = vcombine.low %v135_v23, %v135_v23  ;;  %vm855_vm2 = vcmask 261120  }
  0x47   :  { %v1640_v27 = vld [vmem:[%s2136_s4 + $0x1b8] sm:$0xff]   ;;  %v851_v29 = vld [vmem:[%s2137_s5 + $0x40] sm:$0xff]  ;;  %v852_v30 = vld [vmem:[%s2137_s5 + $0x48] sm:$0xff] }
  0x48   :  { %1397 = vmatpush3.bf16.msra.mxu0 %v1636_v21  ;;  %834 = vmatprep.mubr.bf16.mxu0 %v1239_v24  ;;  %v1528_v31 = vpack.c.bf16 %v852_v30, %v851_v29  ;;  %v853_v32 = vld [vmem:[%s2137_s5 + $0x50] sm:$0xff]  ;;  %v854_v33 = vld [vmem:[%s2137_s5 + $0x58] sm:$0xff]  ;;  %v1231_v42 = vld [vmem:[%s2140_s8 + $0x1] ss:$0 sm:$0xff] }
  0x49   :  { %1398 = vmatprep.subr.bf16.mxu0 %v1637_v22  ;;  %v1531_v34 = vpack.c.bf16 %v854_v33, %v853_v32  ;;  %v843_v60 = vld [vmem:[%s2137_s5] sm:$0xff]  ;;  %v844_v61 = vld [vmem:[%s2137_s5 + $0x8] sm:$0xff]  ;;  %v845_v3 = vld [vmem:[%s2137_s5 + $0x10] sm:$0xff] }
  0x4a   :  { %1529 = vmatpush3.bf16.msra.mxu1 %v1528_v31  ;;  %v1534_v0 = vpack.c.bf16 %v844_v61, %v843_v60  ;;  %v846_v4 = vld [vmem:[%s2137_s5 + $0x18] sm:$0xff]  ;;  %v847_v6 = vld [vmem:[%s2137_s5 + $0x20] sm:$0xff]  ;;  %v848_v8 = vld [vmem:[%s2137_s5 + $0x28] sm:$0xff] }
  0x4b   :  { %1530 = vmatprep.subr.bf16.mxu1 %v1695_v2  ;;  %v1537_v5 = vpack.c.bf16 %v846_v4, %v845_v3  ;;  %v1540_v9 = vpack.c.bf16 %v848_v8, %v847_v6  ;;  %v849_v10 = vld [vmem:[%s2137_s5 + $0x30] sm:$0xff]  ;;  %v850_v11 = vld [vmem:[%s2137_s5 + $0x38] sm:$0xff]  ;;  %v1229_v12 = vld [vmem:[%s2140_s8] ss:$0 sm:$0xff] }
  0x4c   :  { %1399 = vmatpush3.bf16.msra.mxu0 %v1638_v25  ;;  %v1543_v13 = vpack.c.bf16 %v850_v11, %v849_v10  ;;  %v1010_v16 = vld [vmem:[%s2138_s6] sm:$0xff]  ;;  %v1011_v17 = vld [vmem:[%s2138_s6 + $0x8] sm:$0xff]  ;;  %v1012_v18 = vld [vmem:[%s2138_s6 + $0x10] sm:$0xff] }
  0x4d   :  { %1400 = vmatprep.subr.bf16.mxu0 %v1639_v26  ;;  %v1546_v19 = vpack.c.bf16 %v1011_v17, %v1010_v16  ;;  %v1013_v20 = vld [vmem:[%s2138_s6 + $0x18] sm:$0xff]  ;;  %v1015_v22 = vld [vmem:[%s2138_s6 + $0x28] sm:$0xff]  ;;  %v1016_v24 = vld [vmem:[%s2138_s6 + $0x30] sm:$0xff] }
  0x4e   :  { %1532 = vmatpush3.bf16.msra.mxu1 %v1531_v34  ;;  %v1549_v21 = vpack.c.bf16 %v1013_v20, %v1012_v18  ;;  %v1017_v25 = vld [vmem:[%s2138_s6 + $0x38] sm:$0xff]  ;;  %v1306_v32 = vld [vmem:[%s2140_s8 + $0x2] ss:$0 sm:$0xff] }
  0x4f   :  { %1533 = vmatprep.subr.bf16.mxu1 %v1695_v2  ;;  %v1555_v26 = vpack.c.bf16 %v1017_v25, %v1016_v24 }
  0x50   :  { %1401 = vmatpush3.bf16.msra.mxu0 %v1640_v27  ;;  %v1098_v27 = vld [vmem:[%s2139_s7] sm:$0xff] }
  0x51   :  { %1545 = vmatprep.subr.bf16.mxu0 %v1695_v2 }
  0x53   :  { %835 = vmatmul.mubr.bf16.vlgmr.msra.gmra.mrb[8].mxu0 %v1238_v28  ;;  %v1099_v28 = vld [vmem:[%s2139_s7 + $0x8] sm:$0xff] }
  0x54   :  { %1501 = vmatprep.mubr.msk.f32.mxu0 %vm1696_vm0, %v1697_v7  ;;  %1547 = vmatpush3.bf16.msra.mxu0 %v1546_v19  ;;  %v1558_v29 = vpack.c.bf16 %v1099_v28, %v1098_v27 }
  0x55   :  { %1548 = vmatprep.subr.bf16.mxu0 %v1695_v2 }
  0x58   :  { %1550 = vmatpush3.bf16.msra.mxu0 %v1549_v21 }
  0x59   :  { %1551 = vmatprep.subr.bf16.mxu0 %v1695_v2 }
  0xe6   :  { %v127_v35 = vpop.f32.mrb[0].mxu0 }
  0xe7   :  { %v1454_v36 = vpop.f32.mrb[1].mxu0  ;;  %v128_v14 = vadd.f32 %v1229_v12, %v127_v35 }
  0xe9   :  { %v131_v15 = vmax.f32 %v128_v14, 0.0 }
  0xf6   :  { %v1336_v37 = vpop.f32.mrb[0].mxu1 }
  0xf7   :  { %v1337_v38 = vpop.f32.mrb[1].mxu1 }
  0xf8   :  { %v1338_v39 = vadd.f32 %v1337_v38, %v1336_v37  ;;  %v1339_v40 = vpop.f32.mrb[2].mxu1  ;;  %v1100_v38 = vld [vmem:[%s2139_s7 + $0x10] sm:$0xff] }
  0xf9   :  { %v1340_v41 = vpop.f32.mrb[3].mxu1  ;;  %v1307_v40 = vld [vmem:[%s2140_s8 + $0x3] ss:$0 sm:$0xff] }
  0xfa   :  { %v717_v43 = vadd.f32 %v1338_v39, %v1231_v42 }
 0x106   :  { %v1358_v44 = vpop.f32.mrb[4].mxu0 }
 0x107   :  { %v1359_v45 = vpop.f32.mrb[5].mxu0 }
 0x108   :  { %v1360_v46 = vadd.f32 %v1359_v45, %v1358_v44  ;;  %v1361_v47 = vpop.f32.mrb[6].mxu0  ;;  %v1309_v45 = vld [vmem:[%s2140_s8 + $0x4] ss:$0 sm:$0xff]  ;;  %s1699_s8 = smov [#allocation2]  }
 0x109   :  { %v1362_v48 = vpop.f32.mrb[7].mxu0  ;;  %s1207_s21 = sshll.u32 %s1699_s8, 4  ;;  %s1208_s21 = int_to_ptr.vmem [resolvable:$true] %s1207_s21 }
 0x10a   :  { %v757_v49 = vadd.f32 %v1360_v46, %v717_v43  ;;  %s1647_s22 = scalar_lea.vmem %s1208_s21, 128  ;;  %p1652_p1 = scmp.lt.s32.totalorder %s1208_s21, %s1208_s21 }
 0x10b   :  { %p1648_p0 = scmp.ne.s32.totalorder %s1208_s21, %s1647_s22  ;;  %p1653_p2 = scmp.lt.s32.totalorder %s1647_s22, %s1647_s22 }
 0x10d   :  { %p1654_p3 = por %p1653_p2, %p1652_p1 }
 0x10f   :  { %p1655_p4 = pnand %p1654_p3, %p1648_p0 }
 0x116   :  { %v1380_v50 = vpop.f32.mrb[4].mxu1 }
 0x117   :  { %v1381_v51 = vpop.f32.mrb[5].mxu1 }
 0x118   :  { %v1382_v52 = vadd.f32 %v1381_v51, %v1380_v50  ;;  %v1383_v53 = vpop.f32.mrb[6].mxu1  ;;  %v1698_v50 = vmov 0  }
 0x119   :  { %v1384_v54 = vpop.f32.mrb[7].mxu1  ;;  %1569 = vset.pattern.permute.xlu1 %v1698_v50  ;;  %1570 = vset.pattern.permute.xlu0 %v1698_v50 }
 0x11a   :  { %v797_v55 = vadd.f32 %v1382_v52, %v757_v49  ;;  %v1193_v49 = vld [vmem:[%s2134_s2] sm:$0xff] }
 0x11b   :  { %1195 = vperm.xlu1 %1569, %v1193_v49  }
 0x126   :  { %v1402_v56 = vpop.f32.mrb[8].mxu0 }
 0x127   :  { %v1403_v57 = vpop.f32.mrb[9].mxu0 }
 0x128   :  { %v1404_v58 = vadd.f32 %v1403_v57, %v1402_v56  ;;  %v1405_v59 = vpop.f32.mrb[10].mxu0 }
 0x129   :  { %v1406_v62 = vpop.f32.mrb[11].mxu0 }
 0x12a   :  { %v837_v63 = vadd.f32 %v1404_v58, %v797_v55 }
 0x12c   :  { %v842_v1 = vmax.f32 %v837_v63, 0.0 }
 0x12e   :  { %1464 = vmatmul.mubr.msk.f32.vlgmr.msra.gmra.mrb[8].mxu1 %vm855_vm2, %v842_v1 }
 0x12f   :  { %1535 = vmatpush3.bf16.msra.mxu1 %v1534_v0  ;;  %1482 = vmatprep.mubr.msk.f32.mxu1 %vm1696_vm0, %v1697_v7 }
 0x130   :  { %1536 = vmatprep.subr.bf16.mxu1 %v1695_v2 }
 0x133   :  { %1538 = vmatpush3.bf16.msra.mxu1 %v1537_v5 }
 0x134   :  { %1539 = vmatprep.subr.bf16.mxu1 %v1695_v2 }
 0x137   :  { %1541 = vmatpush3.bf16.msra.mxu1 %v1540_v9 }
 0x138   :  { %1542 = vmatprep.subr.bf16.mxu1 %v1695_v2 }
 0x13b   :  { %1544 = vmatpush3.bf16.msra.mxu1 %v1543_v13 }
 0x13c   :  { %1557 = vmatprep.subr.bf16.mxu1 %v1695_v2 }
 0x13e   :  { %1483 = vmatmul.mubr.msk.f32.vlgmr.msra.gmra.mrb[10].mxu1 %vm57_vm1, %v131_v15 }
 0x13f   :  { %1512 = vmatprep.mubr.msk.f32.mxu1 %vm1696_vm0, %v1697_v7  ;;  %v1014_v7 = vld [vmem:[%s2138_s6 + $0x20] sm:$0xff]  ;;  %1559 = vmatpush3.bf16.msra.mxu1 %v1558_v29 }
 0x140   :  { %v1552_v23 = vpack.c.bf16 %v1015_v22, %v1014_v7  ;;  %1560 = vmatprep.subr.bf16.mxu1 %v1695_v2 }
 0x142   :  { %1553 = vmatpush3.bf16.msra.mxu0 %v1552_v23 }
 0x143   :  { %1554 = vmatprep.subr.bf16.mxu0 %v1695_v2  ;;  %v1101_v2 = vld [vmem:[%s2139_s7 + $0x18] sm:$0xff] }
 0x144   :  { %v1561_v39 = vpack.c.bf16 %v1101_v2, %v1100_v38 }
 0x146   :  { %1556 = vmatpush3.bf16.msra.mxu0 %v1555_v26  ;;  %1562 = vmatpush3.bf16.msra.mxu1 %v1561_v39 }
 0x201   :  { %v925_v30 = vpop.f32.mrb[8].mxu1 }
 0x202   :  { %v1465_v31 = vpop.f32.mrb[9].mxu1 }
 0x211   :  { %v998_v33 = vpop.f32.mrb[10].mxu1 }
 0x212   :  { %v999_v34 = vadd.f32 %v998_v33, %v925_v30  ;;  %v1484_v35 = vpop.f32.mrb[11].mxu1 }
 0x214   :  { %v1008_v36 = vadd.f32 %v1306_v32, %v999_v34 }
 0x216   :  { %v1009_v37 = vmax.f32 %v1008_v36, 0.0 }
 0x218   :  { %1502 = vmatmul.mubr.msk.f32.vlgmr.msra.gmra.mrb[2].mxu0 %vm57_vm1, %v1009_v37 }
 0x2eb   :  { %v1093_v41 = vpop.f32.mrb[2].mxu0 }
 0x2ec   :  { %v1094_v42 = vadd.f32 %v1307_v40, %v1093_v41  ;;  %v1503_v43 = vpop.f32.mrb[3].mxu0 }
 0x2ee   :  { %v1097_v44 = vmax.f32 %v1094_v42, 0.0 }
 0x2f0   :  { %1513 = vmatmul.mubr.msk.f32.vlgmr.msra.gmra.mrb[12].mxu1 %vm855_vm2, %v1097_v44 }
 0x3c3   :  { %v1177_v46 = vpop.f32.mrb[12].mxu1 }
 0x3c4   :  { %v1178_v47 = vadd.f32 %v1309_v45, %v1177_v46  ;;  %v1514_v48 = vpop.f32.mrb[13].mxu1 }
 0x3c6   :  { %1181 = vst [vmem:[#allocation2] sm:$0xff] %v1178_v47  ;;  %1182 = vmax.xlane.f32.xlu0 %v1178_v47 }
 0x453   :  { %v1183_v51 = vpop.xlane.xlu0 %1182 }
 0x454   :  { %v1184_v52 = vsub.f32 %v1178_v47, %v1183_v51 }
 0x456   :  { %v1185_v53 = vmul.f32 1.442695, %v1184_v52 }
 0x458   :  { %1643 = vpow2.f32 %v1185_v53 }
 0x462   :  { %v1644_v54 = vpop.eup %1643 }
 0x463   :  { %1187 = vadd.xlane.f32.xlu0 %v1644_v54 }
 0x464   :  { %1658 = shalt.err (!%p1655_p4)
}
 0x465   :  { %s1659_s24 = scalar_lea.hbm %s2141_s9, 128 }
 0x466   :  { %p1660_p5 = scmp.ne.s32.totalorder %s2141_s9, %s1659_s24  ;;  %p1663_p6 = scmp.lt.u32.totalorder %s1659_s24, %s2141_s9 }
 0x468   :  { %p1665_p7 = pnand %p1663_p6, %p1660_p5 }
 0x46a   :  { %1668 = shalt.err (!%p1665_p7)
}
 0x46b   :  { %1210 = dma.vmem_to_hbm [thread:$0]  %s1208_s21, 128, %s2141_s9, [#allocation3]   ;;  %v1191_v56 = vlaneseq  ;;  %v1196_v58 = vpop.permute.xlu1 %1195 }
 0x46c   :  { %s1700_s30 = smov [#allocation4]  }
 0x46d   :  { %v1192_v57 = vand.u32 127, %v1191_v56  ;;  %s1217_s11 = sshll.u32 %s1700_s30, 4  ;;  %s1218_s11 = int_to_ptr.vmem [resolvable:$true] %s1217_s11 }
 0x46e   :  { %s1669_s12 = scalar_lea.vmem %s1218_s11, 128  ;;  %p1674_p9 = scmp.lt.s32.totalorder %s1218_s11, %s1218_s11 }
 0x46f   :  { %vm1197_vm3 = vcmp.eq.s32.totalorder %v1192_v57, %v1196_v58  ;;  %p1670_p8 = scmp.ne.s32.totalorder %s1218_s11, %s1669_s12  ;;  %p1675_p10 = scmp.lt.s32.totalorder %s1669_s12, %s1669_s12 }
 0x471   :  { %p1676_p11 = por %p1675_p10, %p1674_p9 }
 0x473   :  { %p1677_p12 = pnand %p1676_p11, %p1670_p8 }
 0x4f0   :  { %v1188_v55 = vpop.xlane.xlu0 %1187 }
 0x4f1   :  { %1645 = vlog2.f32 %v1188_v55 }
 0x4fb   :  { %v1646_v59 = vpop.eup %1645 }
 0x4fc   :  { %v1190_v60 = vmul.f32 0.6931472, %v1646_v59 }
 0x4fe   :  { %v1198_v61 = vsub.f32 %v1190_v60, %v1184_v52 }
 0x500   :  { %v1199_v62 = vsel %vm1197_vm3, %v1198_v61, 0.0 }
 0x501   :  { %1200 = vst [vmem:[#allocation4] sm:$0xff] %v1199_v62 }
 0x502   :  { %1680 = shalt.err (!%p1677_p12)
}
 0x503   :  { %s1681_s14 = scalar_lea.hbm %s2142_s10, 128 }
 0x504   :  { %p1682_p13 = scmp.ne.s32.totalorder %s2142_s10, %s1681_s14  ;;  %p1685_p0 = scmp.lt.u32.totalorder %s1681_s14, %s2142_s10 }
 0x506   :  { %p1687_p1 = pnand %p1685_p0, %p1682_p13 }
 0x508   :  { %1690 = shalt.err (!%p1687_p1)
}
 0x509   :  { %1220 = dma.vmem_to_hbm [thread:$0]  %s1218_s11, 128, %s2142_s10, [#allocation5]  }
 0x50a   :  { %1691 = dma.done.wait [#allocation3], 128  }
 0x50b   :  { %1692 = vsyncadd [#allocation3], 4294967168 }
 0x50c   :  { %1693 = dma.done.wait [#allocation5], 128  }
 0x50d   :  { %1694 = vsyncadd [#allocation5], 4294967168 }
 0x50e   :  { %1227 = vsyncpa [#allocation3], 1 }
 0x50f   :  { %1228 = vsyncpa [#allocation5], 1 }

</bundles_post_ra>
